<compile_context>
chip_gen: v7x
topology: tpu7x:2x2x1
jax: 0.10.0
libtpu: 0.0.40
codegen_flags: <defaults>
</compile_context>

<pallas_src>
import functools
from math import pi as PI

import jax
import jax.numpy as jnp
from jax.experimental import pallas as pl
from jax.experimental.pallas import tpu as pltpu


def bessel_basis_kernel(dist_ref, freq_ref, out_ref, *, inv_cutoff, p):
    # Envelope polynomial coefficients (match the given PyTorch Envelope).
    a = -(p + 1) * (p + 2) / 2.0
    b = float(p * (p + 2))
    c = -p * (p + 1) / 2.0

    # (1, tile_e) lane-dense slab; multiply by precomputed 1/cutoff (no vdiv).
    x = dist_ref[...] * inv_cutoff

    # x**p with a Python int p lowers to an integer-pow multiply chain (VALU),
    # not exp(p*log x) on the EUP -- keeps the EUP free for sin().
    x_pow_p0 = x ** p                          # x^p
    x_pow_p1 = x_pow_p0 * x                    # x^(p+1)
    env = 1.0 / x + a * x_pow_p0 + b * x_pow_p1 + c * x_pow_p1 * x
    env = jnp.where(x < 1.0, env, 0.0)         # (1, tile_e)

    freq = freq_ref[...]                       # (R, 1)
    # (R,1) * (1,tile_e) -> (R, tile_e): all VPU/EUP work is lane-dense.
    out_ref[...] = env * jnp.sin(freq * x)     # (R, tile_e)


def _round_up(n, m):
    return ((n + m - 1) // m) * m


def bessel_basis_layer(dist, freq, *, cutoff, envelope_exponent=6, tile_e=None):
    """dist: (E,) float32 (strictly > 0), freq: (R,) float32 -> (E, R) float32."""
    E = dist.shape[0]
    R = freq.shape[0]

    # Lane-dense tile along E: at least 128, up to 16384 lanes per step
    # (8 * 16384 * 4 B = 512 KiB output block; double-buffered ~1 MiB, far
    # below the scoped-VMEM limit on v5e/v6e/v7x).
    if tile_e is None:
        tile_e = min(16384, _round_up(max(E, 1), 128))
    tile_e = _round_up(int(tile_e), 128)

    # Pad ragged E with a safe positive value (x = 1 -> env = 0); padded
    # columns are sliced away below.  No "E % tile" assert needed.
    E_pad = _round_up(E, tile_e)
    dist_p = dist.astype(jnp.float32)
    if E_pad != E:
        dist_p = jnp.pad(dist_p, (0, E_pad - E), constant_values=float(cutoff))

    dist2d = dist_p.reshape(1, E_pad)                 # E on the lane axis
    freq2d = freq.astype(jnp.float32).reshape(R, 1)   # R on the sublane axis

    kernel = functools.partial(
        bessel_basis_kernel,
        inv_cutoff=1.0 / float(cutoff),
        p=int(envelope_exponent),
    )

    out_re = pl.pallas_call(
        kernel,
        out_shape=jax.ShapeDtypeStruct((R, E_pad), jnp.float32),
        grid_spec=pltpu.PrefetchScalarGridSpec(
            num_scalar_prefetch=0,
            grid=(E_pad // tile_e,),
            in_specs=[
                pl.BlockSpec((1, tile_e), lambda i: (0, i)),  # dist row block
                pl.BlockSpec((R, 1), lambda i: (0, 0)),        # freq (resident)
            ],
            out_specs=pl.BlockSpec((R, tile_e), lambda i: (0, i)),
        ),
        compiler_params=pltpu.CompilerParams(
            dimension_semantics=("parallel",),
        ),
    )(dist2d, freq2d)

    # Kernel emits lane-dense (R, E); transpose back to the module's (E, R).
    return out_re[:, :E].T


if __name__ == "__main__":
    num_radial = 8
    cutoff = 5.0
    envelope_exponent = 6
    E = 200  # ragged edge count (not a multiple of 128) to exercise padding

    # Deterministic parameter init: freq_k = k * pi, k = 1..num_radial
    freq = jnp.arange(1, num_radial + 1, dtype=jnp.float32) * PI

    key = jax.random.PRNGKey(0)
    # distances in (0, ~1.5*cutoff) so both branches of the envelope are hit
    dist = jax.random.uniform(
        key, (E,), dtype=jnp.float32, minval=0.05, maxval=1.5 * cutoff
    )

    out = bessel_basis_layer(
        dist, freq, cutoff=cutoff, envelope_exponent=envelope_exponent
    )
    out = jax.block_until_ready(out)

    # Pure-JAX reference (same math as the given PyTorch module).
    x = (dist / cutoff)[:, None]
    p = envelope_exponent
    a = -(p + 1) * (p + 2) / 2.0
    b = p * (p + 2)
    c = -p * (p + 1) / 2.0
    xp0 = x ** p
    xp1 = xp0 * x
    env = jnp.where(x < 1.0, 1.0 / x + a * xp0 + b * xp1 + c * xp1 * x, 0.0)
    ref = env * jnp.sin(freq[None, :] * x)

    assert out.shape == (E, num_radial)
    assert jnp.allclose(out, ref, atol=1e-5, rtol=1e-5)
    print("KERNEL_OK")
</pallas_src>

<mosaic_0001>
module attributes {stable_mosaic.version = 11 : i64} {
  func.func @bessel_basis_kernel(%arg0: i32, %arg1: memref<1x256xf32, #tpu.memory_space<vmem>>, %arg2: memref<8x1xf32, #tpu.memory_space<vmem>>, %arg3: memref<8x256xf32, #tpu.memory_space<vmem>>) attributes {dimension_semantics = [#tpu.dimension_semantics<parallel>], iteration_bounds = array<i64: 1>, scalar_prefetch = 0 : i64, scratch_operands = 0 : i64, tpu.core_type = #tpu.core_type<tc>, window_params = [{transform_indices = @transform_0, window_bounds = array<i64: 1, 256>}, {pipeline_mode = #tpu.pipeline_mode<synchronous>, transform_indices = @transform_1, window_bounds = array<i64: 8, 1>}, {transform_indices = @transform_2, window_bounds = array<i64: 8, 256>}]} {
    %c0 = arith.constant 0 : index
    %c0_0 = arith.constant 0 : index
    %0 = vector.load %arg1[%c0, %c0_0] : memref<1x256xf32, #tpu.memory_space<vmem>>, vector<1x256xf32>
    %cst = arith.constant 2.000000e-01 : f32
    %1 = vector.broadcast %cst : f32 to vector<1x256xf32>
    %2 = arith.mulf %0, %1 : vector<1x256xf32>
    %3 = arith.mulf %2, %2 : vector<1x256xf32>
    %4 = arith.mulf %3, %3 : vector<1x256xf32>
    %5 = arith.mulf %3, %4 : vector<1x256xf32>
    %6 = arith.mulf %5, %2 : vector<1x256xf32>
    %cst_1 = arith.constant 1.000000e+00 : f32
    %7 = vector.broadcast %cst_1 : f32 to vector<1x256xf32>
    %8 = arith.divf %7, %2 : vector<1x256xf32>
    %cst_2 = arith.constant -2.800000e+01 : f32
    %9 = vector.broadcast %cst_2 : f32 to vector<1x256xf32>
    %10 = arith.mulf %9, %5 : vector<1x256xf32>
    %11 = arith.addf %8, %10 : vector<1x256xf32>
    %cst_3 = arith.constant 4.800000e+01 : f32
    %12 = vector.broadcast %cst_3 : f32 to vector<1x256xf32>
    %13 = arith.mulf %12, %6 : vector<1x256xf32>
    %14 = arith.addf %11, %13 : vector<1x256xf32>
    %cst_4 = arith.constant -2.100000e+01 : f32
    %15 = vector.broadcast %cst_4 : f32 to vector<1x256xf32>
    %16 = arith.mulf %15, %6 : vector<1x256xf32>
    %17 = arith.mulf %16, %2 : vector<1x256xf32>
    %18 = arith.addf %14, %17 : vector<1x256xf32>
    %cst_5 = arith.constant 1.000000e+00 : f32
    %19 = vector.broadcast %cst_5 : f32 to vector<1x256xf32>
    %20 = arith.cmpf olt, %2, %19 : vector<1x256xf32>
    %cst_6 = arith.constant 0.000000e+00 : f32
    %21 = vector.broadcast %cst_6 : f32 to vector<1x256xf32>
    %22 = arith.select %20, %18, %21 : vector<1x256xi1>, vector<1x256xf32>
    %c0_7 = arith.constant 0 : index
    %c0_8 = arith.constant 0 : index
    %23 = vector.load %arg2[%c0_7, %c0_8] : memref<8x1xf32, #tpu.memory_space<vmem>>, vector<8x1xf32>
    %24 = vector.broadcast %23 : vector<8x1xf32> to vector<8x256xf32>
    %25 = vector.broadcast %2 : vector<1x256xf32> to vector<8x256xf32>
    %26 = arith.mulf %24, %25 : vector<8x256xf32>
    %27 = math.sin %26 : vector<8x256xf32>
    %28 = vector.broadcast %22 : vector<1x256xf32> to vector<8x256xf32>
    %29 = arith.mulf %28, %27 : vector<8x256xf32>
    %c0_9 = arith.constant 0 : index
    %c0_10 = arith.constant 0 : index
    %30 = vector.load %arg3[%c0_9, %c0_10] : memref<8x256xf32, #tpu.memory_space<vmem>>, vector<8x256xf32>
    tpu.vector_store %arg3[%c0_9, %c0_10], %29 {strides = array<i32>} : memref<8x256xf32, #tpu.memory_space<vmem>>, vector<8x256xf32>,
    return
  }
  func.func @transform_0(%arg0: i32) -> (i32, i32) {
    %c0_i32 = arith.constant 0 : i32
    %c0_i32_0 = arith.constant 0 : i32
    return %c0_i32, %arg0 : i32, i32
  }
  func.func @transform_1(%arg0: i32) -> (i32, i32) {
    %c0_i32 = arith.constant 0 : i32
    %c0_i32_0 = arith.constant 0 : i32
    %c0_i32_1 = arith.constant 0 : i32
    return %c0_i32, %c0_i32_0 : i32, i32
  }
  func.func @transform_2(%arg0: i32) -> (i32, i32) {
    %c0_i32 = arith.constant 0 : i32
    %c0_i32_0 = arith.constant 0 : i32
    return %c0_i32, %arg0 : i32, i32
  }
}

</mosaic_0001>

<bundles_post_ra>
// kernel: tpu_custom_call.1
= control target key start
LH: loop header
LB: loop body
LE: loop exit
PB: predicated region body
PF: predicated region fallthrough
CT: control target
= control target key end

     0   :  { %v344_v1 = vmov 0   ;;  %s487_s0 = inlined_call_operand.vmem [shape: f32[1,256], index: 0, kind: input, shape index: {}]   ;;  %s488_s1 = inlined_call_operand.vmem [shape: f32[8,1], index: 1, kind: input, shape index: {}]   ;;  %s489_s2 = inlined_call_operand.hbm [shape: f32[8,256], index: 2, kind: output, shape index: {}]  }
   0x1   :  { %v29_v0 = vld [vmem:[%s488_s1] sm:$0xff]  ;;  %309 = vset.pattern.permute.xlu0 %v344_v1 }
   0x2   :  { %32 = vperm.xlu0 %309, %v29_v0  }
   0x3   :  { %7 = vsyncpa [#allocation3], 0  ;;  %v36_v2 = vlaneseq  ;;  %v12_v4 = vld [vmem:[%s487_s0] sm:$0x3]  ;;  %v345_v33 = vmov 683565275  }
   0x4   :  { %v377_v7 = vmul.f32 0.2, %v12_v4  ;;  %v346_v37 = vmov 2475754826   ;;  %v347_v39 = vmov 2131351028  }
   0x5   :  { %v370_v3 = vshrl.u32 %v36_v2, 7  ;;  %v348_v41 = vmov 2102212464   ;;  %v349_v43 = vmov 920167782   ;;  %s351_s0 = smov [#allocation2]  }
   0x6   :  { %v350_v50 = vmov 1326507024   ;;  %310 = vrcp.f32 %v377_v7  ;;  %s277_s1 = sshll.u32 %s351_s0, 4  ;;  %s278_s1 = int_to_ptr.vmem [resolvable:$true] %s277_s1 }
   0x7   :  { %v38_v5 = vsub.s32 0, %v370_v3  ;;  %v42_v6 = vsub.s32 1, %v370_v3  ;;  %s320_s13 = scalar_lea.vmem %s278_s1, 256  ;;  %p325_p1 = scmp.lt.s32.totalorder %s278_s1, %s278_s1 }
   0x8   :  { %p321_p0 = scmp.ne.s32.totalorder %s278_s1, %s320_s13  ;;  %p326_p2 = scmp.lt.s32.totalorder %s320_s13, %s320_s13 }
   0x9   :  { %v39_v8 = vrot.slane %v377_v7, %v38_v5  ;;  %v43_v9 = vrot.slane %v377_v7, %v42_v6 }
   0xa   :  { %p327_p3 = por %p326_p2, %p325_p1 }
   0xc   :  { %p328_p4 = pnand %p327_p3, %p321_p0 }
  0x81   :  { %v33_v10 = vpop.permute.xlu0 %32 }
  0x82   :  { %v385_v11 = vmul.f32 %v39_v8, %v33_v10  ;;  %v387_v12 = vmul.f32 %v43_v9, %v33_v10 }
  0x84   :  { %v48_v13 = vand.u32 2147483647, %v385_v11  ;;  %v51_v14 = vand.u32 2139095040, %v385_v11  ;;  %v155_v15 = vand.u32 2139095040, %v387_v12  ;;  %v152_v18 = vand.u32 2147483647, %v387_v12 }
  0x85   :  { %vm50_vm14 = vcmp.lt.s32.totalorder %v385_v11, 0 }
  0x86   :  { %v52_v16 = vshrl.u32 %v51_v14, 23  ;;  %v55_v17 = vand.u32 8388607, %v48_v13  ;;  %v156_v19 = vshrl.u32 %v155_v15, 23  ;;  %v397_v24 = vand.u32 8388607, %v152_v18 }
  0x87   :  { %vm49_vm15 = vcmp.le.f32.partialorder %v48_v13, 0.7853982 }
  0x88   :  { %v285_v20 = vadd.s32 4294967169, %v52_v16  ;;  %v289_v21 = vadd.s32 4294967169, %v156_v19  ;;  %v56_v23 = vor.u32 8388608, %v55_v17  ;;  %v160_v31 = vor.u32 8388608, %v397_v24 }
  0x8a   :  { %v58_v22 = vadd.s32 1, %v285_v20  ;;  %v162_v25 = vadd.s32 1, %v289_v21  ;;  %v399_v30 = vshll.u32 %v56_v23, 8 }
  0x8c   :  { %vm59_vm0 = vcmp.gt.s32.totalorder %v58_v22, 0  ;;  %vm163_vm1 = vcmp.gt.s32.totalorder %v162_v25, 0 }
  0x8d   :  { %v60_v26 = vsel %vm59_vm0, %v58_v22, 0  ;;  %v164_v29 = vsel %vm163_vm1, %v162_v25, 0  ;;  %vm154_vm0 = vcmp.lt.s32.totalorder %v387_v12, 0  ;;  %vm458_vm1 = vcmp.le.f32.partialorder %v152_v18, 0.7853982 }
  0x8e   :  { %v61_v27 = vshrl.u32 %v60_v26, 5  ;;  %v62_v28 = vand.u32 31, %v60_v26  ;;  %v402_v35 = vshrl.u32 %v164_v29, 5  ;;  %v166_v36 = vand.u32 31, %v164_v29 }
  0x90   :  { %v63_v32 = vsub.s32 32, %v62_v28  ;;  %v65_v34 = vshll.u32 %v345_v33, %v62_v28  ;;  %v68_v38 = vshll.u32 %v346_v37, %v62_v28  ;;  %v71_v40 = vshll.u32 %v347_v39, %v62_v28 }
  0x91   :  { %v74_v42 = vshll.u32 %v348_v41, %v62_v28  ;;  %v77_v44 = vshll.u32 %v349_v43, %v62_v28  ;;  %vm80_vm2 = vcmp.lt.s32.totalorder %v61_v27, 1  ;;  %vm81_vm3 = vcmp.lt.s32.totalorder %v61_v27, 2 }
  0x92   :  { %v66_v45 = vshrl.u32 %v346_v37, %v63_v32  ;;  %v69_v46 = vshrl.u32 %v347_v39, %v63_v32  ;;  %v72_v47 = vshrl.u32 %v348_v41, %v63_v32  ;;  %v64_v48 = vshrl.u32 %v345_v33, %v63_v32 }
  0x93   :  { %v75_v49 = vshrl.u32 %v349_v43, %v63_v32  ;;  %v78_v51 = vshrl.u32 %v350_v50, %v63_v32  ;;  %v167_v55 = vsub.s32 32, %v166_v36  ;;  %vm82_vm4 = vcmp.lt.s32.totalorder %v61_v27, 3 }
  0x94   :  { %v67_v52 = vor.u32 %v66_v45, %v65_v34  ;;  %v70_v53 = vor.u32 %v69_v46, %v68_v38  ;;  %v73_v54 = vor.u32 %v72_v47, %v71_v40  ;;  %vm83_vm5 = vcmp.lt.s32.totalorder %v61_v27, 4 }
  0x95   :  { %v76_v56 = vor.u32 %v75_v49, %v74_v42  ;;  %v79_v57 = vor.u32 %v78_v51, %v77_v44  ;;  %v169_v1 = vshll.u32 %v345_v33, %v166_v36  ;;  %v170_v8 = vshrl.u32 %v346_v37, %v167_v55 }
  0x96   :  { %v84_v58 = vsel %vm80_vm2, %v64_v48, %v67_v52  ;;  %v85_v59 = vsel %vm83_vm5, %v73_v54, 2102212464  ;;  %v88_v60 = vsel %vm80_vm2, %v67_v52, %v70_v53  ;;  %v92_v61 = vsel %vm80_vm2, %v70_v53, %v73_v54 }
  0x97   :  { %v86_v62 = vsel %vm82_vm4, %v70_v53, %v85_v59  ;;  %v89_v63 = vsel %vm83_vm5, %v76_v56, 920167782  ;;  %v93_v0 = vsel %vm83_vm5, %v79_v57, 1326507024  ;;  %v172_v9 = vshll.u32 %v346_v37, %v166_v36 }
  0x98   :  { %v90_v2 = vsel %vm82_vm4, %v73_v54, %v89_v63  ;;  %v94_v4 = vsel %vm82_vm4, %v76_v56, %v93_v0  ;;  %v87_v10 = vsel %vm81_vm3, %v84_v58, %v86_v62  ;;  %v173_v16 = vshrl.u32 %v347_v39, %v167_v55 }
  0x99   :  { %v91_v14 = vsel %vm81_vm3, %v88_v60, %v90_v2  ;;  %v95_v15 = vsel %vm81_vm3, %v92_v61, %v94_v4  ;;  %v171_v22 = vor.u32 %v170_v8, %v169_v1  ;;  %v175_v24 = vshll.u32 %v347_v39, %v166_v36 }
  0x9a   :  { %v411_v17 = vmul.u32.u64.low %v399_v30, %v95_v15  ;;  %v412_v19 = vmul.u32.u64.high %v399_v30, %v95_v15, %v411_v17  ;;  %v415_v20 = vmul.u32.u64.low %v399_v30, %v91_v14  ;;  %v416_v21 = vmul.u32.u64.high %v399_v30, %v91_v14, %v415_v20 }
  0x9b   :  { %v174_v23 = vor.u32 %v173_v16, %v172_v9  ;;  %v176_v25 = vshrl.u32 %v348_v41, %v167_v55  ;;  %v178_v26 = vshll.u32 %v348_v41, %v166_v36  ;;  %v179_v28 = vshrl.u32 %v349_v43, %v167_v55 }
  0x9c   :  { %v182_v29 = vshrl.u32 %v350_v50, %v167_v55  ;;  %v200_v32 = vshll.u32 %v160_v31, 8  ;;  %v103_v27 = vmul.u32 %v399_v30, %v87_v10  ;;  %v168_v34 = vshrl.u32 %v345_v33, %v167_v55 }
  0x9d   :  { %v177_v37 = vor.u32 %v176_v25, %v175_v24  ;;  %v181_v38 = vshll.u32 %v349_v43, %v166_v36  ;;  %vm105_vm6 = vc.u32 %v412_v19, %v415_v20  ;;  %v106_v40 = vadd.s32 1, %v416_v21 }
  0x9e   :  { %v180_v42 = vor.u32 %v179_v28, %v178_v26  ;;  %vm184_vm7 = vcmp.lt.s32.totalorder %v402_v35, 1  ;;  %vm186_vm8 = vcmp.lt.s32.totalorder %v402_v35, 3  ;;  %vm187_vm9 = vcmp.lt.s32.totalorder %v402_v35, 4 }
  0x9f   :  { %v183_v44 = vor.u32 %v182_v29, %v181_v38  ;;  %v192_v39 = vsel %vm184_vm7, %v171_v22, %v174_v23  ;;  %v107_v31 = vsel %vm105_vm6, %v106_v40, %v416_v21  ;;  %v189_v41 = vsel %vm187_vm9, %v177_v37, 2102212464 }
  0xa0   :  { %v193_v30 = vsel %vm187_vm9, %v180_v42, 920167782  ;;  %v196_v33 = vsel %vm184_vm7, %v174_v23, %v177_v37  ;;  %v108_v45 = vadd.s32 %v107_v31, %v103_v27  ;;  %vm185_vm10 = vcmp.lt.s32.totalorder %v402_v35, 2 }
  0xa1   :  { %v194_v36 = vsel %vm186_vm8, %v177_v37, %v193_v30  ;;  %v197_v43 = vsel %vm187_vm9, %v183_v44, 1326507024  ;;  %v188_v46 = vsel %vm184_vm7, %v168_v34, %v171_v22  ;;  %v190_v47 = vsel %vm186_vm8, %v174_v23, %v189_v41 }
  0xa2   :  { %v195_v48 = vsel %vm185_vm10, %v192_v39, %v194_v36  ;;  %v198_v49 = vsel %vm186_vm8, %v180_v42, %v197_v43  ;;  %v109_v50 = vadd.s32 536870912, %v108_v45  ;;  %v191_v57 = vsel %vm185_vm10, %v188_v46, %v190_v47 }
  0xa3   :  { %v199_v51 = vsel %vm185_vm10, %v196_v33, %v198_v49  ;;  %v426_v52 = vmul.u32.u64.low %v200_v32, %v195_v48  ;;  %v427_v53 = vmul.u32.u64.high %v200_v32, %v195_v48, %v426_v52  ;;  %v207_v59 = vmul.u32 %v200_v32, %v191_v57 }
  0xa4   :  { %v429_v54 = vmul.u32.u64.low %v200_v32, %v199_v51  ;;  %v430_v55 = vmul.u32.u64.high %v200_v32, %v199_v51, %v429_v54  ;;  %v432_v56 = vshrl.u32 %v109_v50, 30  ;;  %v14_v10 = vmul.f32 %v377_v7, %v377_v7 }
  0xa5   :  { %v210_v35 = vadd.s32 1, %v427_v53  ;;  %v104_v17 = vadd.s32 %v415_v20, %v412_v19  ;;  %vm27_vm2 = vcmp.lt.f32.partialorder %v377_v7, 1.0  ;;  %vm140_vm6 = vweird.f32 %v385_v11 }
  0xa6   :  { %v111_v58 = vshll.u32 %v432_v56, 30  ;;  %vm209_vm11 = vc.u32 %v430_v55, %v426_v52  ;;  %v15_v23 = vmul.f32 %v14_v10, %v14_v10  ;;  %v208_v20 = vadd.s32 %v426_v52, %v430_v55 }
  0xa7   :  { %v211_v61 = vsel %vm209_vm11, %v210_v35, %v427_v53  ;;  %v134_v33 = vsub.s32 4, %v432_v56  ;;  %vm244_vm10 = vweird.f32 %v387_v12 }
  0xa8   :  { %v112_v60 = vsub.s32 %v108_v45, %v111_v58  ;;  %v212_v62 = vadd.s32 %v211_v61, %v207_v59  ;;  %v16_v34 = vmul.f32 %v15_v23, %v14_v10  ;;  %v311_v45 = vpop.eup %310 }
  0xa9   :  { %v135_v54 = vsel %vm50_vm14, %v134_v33, %v432_v56 }
  0xaa   :  { %v114_v63 = vsub.s32 0, %v112_v60  ;;  %v213_v0 = vadd.s32 536870912, %v212_v62  ;;  %v17_v19 = vmul.f32 %v16_v34, %v377_v7  ;;  %v20_v30 = vmul.f32 -28.0, %v16_v34 }
  0xab   :  { %v137_v59 = vsel %vm49_vm15, 0, %v135_v54 }
  0xac   :  { %v286_v1 = vmin.u32 %v114_v63, %v112_v60  ;;  %v438_v2 = vshrl.u32 %v213_v0, 30  ;;  %v22_v48 = vmul.f32 48.0, %v17_v19  ;;  %v24_v51 = vmul.f32 -21.0, %v17_v19 }
  0xad   :  { %v21_v53 = vadd.f32 %v311_v45, %v20_v30  ;;  %v141_v0 = vadd.s32 3, %v137_v59 }
  0xae   :  { %v116_v4 = vclz %v286_v1  ;;  %v215_v8 = vshll.u32 %v438_v2, 30  ;;  %v25_v61 = vmul.f32 %v24_v51, %v377_v7  ;;  %v238_v63 = vsub.s32 4, %v438_v2 }
  0xaf   :  { %v142_v10 = vand.u32 3, %v141_v0 }
  0xb0   :  { %v287_v9 = vadd.s32 4294967294, %v116_v4  ;;  %v216_v14 = vsub.s32 %v212_v62, %v215_v8  ;;  %v239_v8 = vsel %vm154_vm0, %v238_v63, %v438_v2 }
  0xb1   :  { %v241_v18 = vsel %vm458_vm1, 0, %v239_v8  ;;  %vm147_vm3 = vcmp.eq.s32.totalorder %v142_v10, 2  ;;  %vm144_vm4 = vcmp.eq.s32.totalorder %v142_v10, 0  ;;  %vm143_vm5 = vcmp.lt.s32.totalorder %v142_v10, 2 }
  0xb2   :  { %vm288_vm12 = vcmp.lt.s32.totalorder %v287_v9, 0  ;;  %v218_v16 = vsub.s32 0, %v216_v14 }
  0xb3   :  { %v119_v15 = vsel %vm288_vm12, 0, %v287_v9 }
  0xb4   :  { %v120_v21 = vsub.s32 32, %v119_v15  ;;  %v124_v22 = vsub.s32 4294967266, %v119_v15  ;;  %v290_v24 = vmin.u32 %v218_v16, %v216_v14  ;;  %v121_v25 = vshll.u32 %v112_v60, %v119_v15 }
  0xb5   :  { %v23_v60 = vadd.f32 %v22_v48, %v21_v53 }
  0xb6   :  { %v122_v26 = vshrl.u32 %v104_v17, %v120_v21  ;;  %v125_v28 = vadd.s32 127, %v124_v22  ;;  %v220_v29 = vclz %v290_v24  ;;  %v245_v22 = vadd.s32 3, %v241_v18 }
  0xb7   :  { %v26_v1 = vadd.f32 %v25_v61, %v23_v60 }
  0xb8   :  { %v123_v32 = vor.u32 %v122_v26, %v121_v25  ;;  %v126_v27 = vshll.u32 %v125_v28, 23  ;;  %v291_v37 = vadd.s32 4294967294, %v220_v29  ;;  %v246_v26 = vand.u32 3, %v245_v22 }
  0xb9   :  { %v28_v15 = vsel %vm27_vm2, %v26_v1, 0.0 }
  0xba   :  { %v127_v38 = vor.u32 4788187, %v126_v27  ;;  %vm292_vm13 = vcmp.lt.s32.totalorder %v291_v37, 0  ;;  %v130_v42 = vcvt.s32.f32 %v123_v32  ;;  %v260_v2 = vrot.slane %v28_v15, %v38_v5 }
  0xbb   :  { %v223_v44 = vsel %vm292_vm13, 0, %v291_v37  ;;  %vm251_vm7 = vcmp.eq.s32.totalorder %v246_v26, 2  ;;  %vm248_vm8 = vcmp.eq.s32.totalorder %v246_v26, 0  ;;  %vm247_vm9 = vcmp.lt.s32.totalorder %v246_v26, 2 }
  0xbc   :  { %v128_v40 = vand.u32 2147483647, %v127_v38  ;;  %v224_v39 = vsub.s32 32, %v223_v44  ;;  %v228_v31 = vsub.s32 4294967266, %v223_v44  ;;  %v225_v36 = vshll.u32 %v216_v14, %v223_v44 }
  0xbd   :  { %v264_v38 = vrot.slane %v28_v15, %v42_v6 }
  0xbe   :  { %v131_v41 = vmul.f32 %v130_v42, %v128_v40  ;;  %v226_v43 = vshrl.u32 %v208_v20, %v224_v39  ;;  %v229_v46 = vadd.s32 127, %v228_v31 }
  0xc0   :  { %v132_v47 = vxor.u32 2147483648, %v131_v41  ;;  %v227_v49 = vor.u32 %v226_v43, %v225_v36  ;;  %v230_v50 = vshll.u32 %v229_v46, 23 }
  0xc2   :  { %v133_v52 = vsel %vm50_vm14, %v132_v47, %v131_v41  ;;  %v231_v57 = vor.u32 4788187, %v230_v50  ;;  %v234_v35 = vcvt.s32.f32 %v227_v49 }
  0xc3   :  { %v136_v55 = vsel %vm49_vm15, %v385_v11, %v133_v52 }
  0xc4   :  { %312 = vcosq.f32 %v136_v55  ;;  %v232_v58 = vand.u32 2147483647, %v231_v57 }
  0xc5   :  { %314 = vsinq.f32 %v136_v55 }
  0xc6   :  { %v235_v62 = vmul.f32 %v234_v35, %v232_v58 }
  0xc8   :  { %v236_v13 = vxor.u32 2147483648, %v235_v62 }
  0xca   :  { %v237_v4 = vsel %vm154_vm0, %v236_v13, %v235_v62 }
  0xcb   :  { %v240_v9 = vsel %vm458_vm1, %v387_v12, %v237_v4 }
  0xcc   :  { %316 = vcosq.f32 %v240_v9 }
  0xcd   :  { %318 = vsinq.f32 %v240_v9 }
  0xce   :  { %v313_v14 = vpop.eup %312 }
  0xcf   :  { %v315_v16 = vpop.eup %314  ;;  %v148_v17 = vxor.u32 2147483648, %v313_v14 }
  0xd0   :  { %v145_v21 = vxor.u32 2147483648, %v315_v16 }
  0xd1   :  { %v149_v7 = vsel %vm147_vm3, %v148_v17, %v315_v16 }
  0xd2   :  { %v146_v23 = vsel %vm144_vm4, %v313_v14, %v145_v21 }
  0xd3   :  { %v150_v24 = vsel %vm143_vm5, %v146_v23, %v149_v7 }
  0xd4   :  { %v151_v25 = vsel %vm140_vm6, nan, %v150_v24 }
  0xd5   :  { %v267_v28 = vmul.f32 %v260_v2, %v151_v25 }
  0xd6   :  { %v317_v29 = vpop.eup %316 }
  0xd7   :  { %269 = vst [vmem:[#allocation2] sm:$0xff] %v267_v28  ;;  %v319_v32 = vpop.eup %318  ;;  %v252_v27 = vxor.u32 2147483648, %v317_v29 }
  0xd8   :  { %v249_v34 = vxor.u32 2147483648, %v319_v32 }
  0xd9   :  { %v253_v37 = vsel %vm251_vm7, %v252_v27, %v319_v32 }
  0xda   :  { %v250_v5 = vsel %vm248_vm8, %v317_v29, %v249_v34 }
  0xdb   :  { %v254_v11 = vsel %vm247_vm9, %v250_v5, %v253_v37 }
  0xdc   :  { %v255_v40 = vsel %vm244_vm10, nan, %v254_v11 }
  0xdd   :  { %v268_v42 = vmul.f32 %v264_v38, %v255_v40 }
  0xdf   :  { %270 = vst [vmem:[#allocation2 + $0x8] sm:$0xff] %v268_v42 }
  0xe0   :  { %331 = shalt.err (!%p328_p4)
}
  0xe1   :  { %s332_s16 = scalar_lea.hbm %s489_s2, 256 }
  0xe2   :  { %p333_p5 = scmp.ne.s32.totalorder %s489_s2, %s332_s16  ;;  %p336_p6 = scmp.lt.u32.totalorder %s332_s16, %s489_s2 }
  0xe4   :  { %p338_p7 = pnand %p336_p6, %p333_p5 }
  0xe6   :  { %341 = shalt.err (!%p338_p7)
}
  0xe7   :  { %280 = dma.vmem_to_hbm [thread:$0]  %s278_s1, 256, %s489_s2, [#allocation3]  }
  0xe8   :  { %342 = dma.done.wait [#allocation3], 256  }
  0xe9   :  { %343 = vsyncadd [#allocation3], 4294967040 }
  0xea   :  { %284 = vsyncpa [#allocation3], 1 }

</bundles_post_ra>
